<compile_context>
chip_gen: v7x
topology: tpu7x:2x2x1
jax: 0.10.0
libtpu: 0.0.40
codegen_flags: <defaults>
</compile_context>

<pallas_src>
import functools

import jax
import jax.numpy as jnp
from jax import lax
from jax.experimental import pallas as pl
from jax.experimental.pallas import tpu as pltpu


def _round_up(x, m):
    return ((x + m - 1) // m) * m


def _edge_mlp_kernel(src_ref, dst_ref, edge_ref,
                     w1s_ref, w1d_ref, w1e_ref, b1_ref,
                     w2_ref, b2_ref, o_ref, *, residual, chunk, n_chunks):
    # Weights/biases are tiny; load once per grid step, keep in vregs across
    # the lane-chunk loop.
    w1s = w1s_ref[...]
    w1d = w1d_ref[...]
    w1e = w1e_ref[...]
    b1 = b1_ref[...].astype(jnp.float32)
    # Keep h in f32 for the second matmul; upcast W2 instead of downcasting h
    # (closer parity with the f32 PyTorch forward when storage is bf16).
    w2 = w2_ref[...].astype(jnp.float32)
    b2 = b2_ref[...].astype(jnp.float32)

    def compute_chunk(start):
        cs = pl.ds(start, chunk)
        s = src_ref[:, cs]          # (in_node, chunk)
        d = dst_ref[:, cs]          # (in_node, chunk)
        e = edge_ref[:, cs]         # (in_edge, chunk)
        # First Linear, feature-major: h^T = W1_src @ src^T + W1_dst @ dst^T
        # + W1_edge @ edge^T  (replaces the HBM-materialized concat; f32 acc).
        h = jnp.dot(w1s, s, preferred_element_type=jnp.float32)
        h = h + jnp.dot(w1d, d, preferred_element_type=jnp.float32)
        h = h + jnp.dot(w1e, e, preferred_element_type=jnp.float32)
        h = jnp.maximum(h + b1, 0.0)                        # (hidden, chunk)
        # Second Linear: out^T = W2 @ h^T + b2
        out = jnp.dot(w2, h, preferred_element_type=jnp.float32)
        out = out + b2
        if residual:
            # edge tile already resident in VMEM -> free residual.
            out = out + e.astype(jnp.float32)
        # Lane-dense store: chunk (multiple of 128) sits on the lane axis.
        o_ref[:, cs] = out.astype(o_ref.dtype)

    if n_chunks == 1:
        compute_chunk(0)
    else:
        def body(c, carry):
            compute_chunk(pl.multiple_of(c * chunk, chunk))
            return carry
        lax.fori_loop(0, n_chunks, body, 0)


def edge_sub_model_forward(src_node_features, dest_node_features, edge_attr,
                           params, residual, u=None, batch=None, *,
                           tile_e=8192, lane_chunk=512, min_grid_steps=8,
                           out_dtype=jnp.float32, feature_major_output=False):
    """JAX wrapper mirroring EdgeSubModel.forward.

    `u` and `batch` are unused in the PyTorch forward and ignored here.
    Params are stored in native PyTorch layout: w1 (hidden, 2*in_node+in_edge),
    b1 (hidden,), w2 (out, hidden), b2 (out,).  The kernel computes in the
    feature-major (transposed) layout, which is exactly what (out, in)
    weights want, so only the activations are transposed in the wrapper.
    """
    del u, batch
    w1, b1 = params["w1"], params["b1"]
    w2, b2 = params["w2"], params["b2"]

    E, in_node = src_node_features.shape
    in_edge = edge_attr.shape[1]
    hidden, in_total = w1.shape
    out_features = w2.shape[0]

    assert dest_node_features.shape == (E, in_node)
    assert in_total == 2 * in_node + in_edge
    assert w2.shape == (out_features, hidden)
    if residual:
        assert out_features == in_edge, (
            "residual=True requires out_edge_features == in_edge_features")

    # Split W1 column-wise so the kernel never needs the concatenated input.
    w1s = w1[:, :in_node]
    w1d = w1[:, in_node:2 * in_node]
    w1e = w1[:, 2 * in_node:]
    b1c = b1.reshape(hidden, 1)
    b2c = b2.reshape(out_features, 1)

    # Feature-major activations: (feat, E) so E rides the 128-lane axis.
    src_t = src_node_features.T
    dst_t = dest_node_features.T
    edge_t = edge_attr.T

    # Tile selection: large tiles for DMA efficiency / low per-step overhead,
    # but keep >= min_grid_steps grid steps so megacore sharding (v7x) and
    # double-buffering stay alive.  te is always a multiple of lane_chunk
    # (itself a multiple of 128), which keeps the inner chunk loop exact and
    # every store lane-dense.
    chunk = lane_chunk
    assert chunk % 128 == 0 and chunk >= 128
    assert min_grid_steps >= 1
    te = max(chunk, _round_up(pl.cdiv(E, min_grid_steps), chunk))
    te = min(te, _round_up(tile_e, chunk))
    n_chunks = te // chunk
    grid = (pl.cdiv(E, te),)

    def stream(feat):            # per-edge-tile streamed operand (feat, te)
        return pl.BlockSpec((feat, te), lambda i: (0, i))

    def resident(arr):           # weights/biases: constant block -> VMEM-resident
        return pl.BlockSpec(arr.shape, lambda i: (0, 0))

    kernel = functools.partial(_edge_mlp_kernel, residual=residual,
                               chunk=chunk, n_chunks=n_chunks)

    out_t = pl.pallas_call(
        kernel,
        out_shape=jax.ShapeDtypeStruct((out_features, E), out_dtype),
        grid=grid,
        in_specs=[stream(in_node), stream(in_node), stream(in_edge),
                  resident(w1s), resident(w1d), resident(w1e), resident(b1c),
                  resident(w2), resident(b2c)],
        out_specs=pl.BlockSpec((out_features, te), lambda i: (0, i)),
        compiler_params=pltpu.CompilerParams(
            # E tiles are independent -> megacore-shard on v7x (no-op on
            # single-TC v5e/v6e).
            dimension_semantics=("parallel",)),
    )(src_t, dst_t, edge_t, w1s, w1d, w1e, b1c, w2, b2c)

    if feature_major_output:
        return out_t                      # (out_features, E), lane-dense
    return out_t.T                        # module semantics: (E, out_features)


def init_params(key, in_node_features, in_edge_features, hidden_features,
                out_edge_features, dtype=jnp.float32):
    """Deterministic synthetic init (PyTorch nn.Linear weight shapes)."""
    k1, k2, k3, k4 = jax.random.split(key, 4)
    in_total = 2 * in_node_features + in_edge_features
    w1 = jax.random.normal(k1, (hidden_features, in_total), jnp.float32) * 0.1
    b1 = jax.random.normal(k2, (hidden_features,), jnp.float32) * 0.1
    w2 = jax.random.normal(k3, (out_edge_features, hidden_features),
                           jnp.float32) * 0.1
    b2 = jax.random.normal(k4, (out_edge_features,), jnp.float32) * 0.1
    params = {"w1": w1, "b1": b1, "w2": w2, "b2": b2}
    return {k: v.astype(dtype) for k, v in params.items()}


def reference_forward(src, dest, edge_attr, params, residual):
    x = jnp.concatenate([src, dest, edge_attr], axis=1).astype(jnp.float32)
    w1 = params["w1"].astype(jnp.float32)
    b1 = params["b1"].astype(jnp.float32)
    w2 = params["w2"].astype(jnp.float32)
    b2 = params["b2"].astype(jnp.float32)
    h = jnp.maximum(x @ w1.T + b1, 0.0)
    out = h @ w2.T + b2
    if residual:
        out = out + edge_attr.astype(jnp.float32)
    return out


if __name__ == "__main__":
    # Small shapes consistent with the module; E chosen so the last grid tile
    # and the in-VMEM chunk padding paths are exercised.
    E = 1000
    in_node_features = 4
    in_edge_features = 4
    hidden_features = 32
    out_edge_features = 4   # == in_edge_features so residual is valid

    key = jax.random.PRNGKey(0)
    kp, ks, kd, ke = jax.random.split(key, 4)

    params = init_params(kp, in_node_features, in_edge_features,
                         hidden_features, out_edge_features)

    src = jax.random.normal(ks, (E, in_node_features), jnp.float32)
    dest = jax.random.normal(kd, (E, in_node_features), jnp.float32)
    edge_attr = jax.random.normal(ke, (E, in_edge_features), jnp.float32)

    ref = reference_forward(src, dest, edge_attr, params, residual=True)
    ref_nr = reference_forward(src, dest, edge_attr, params, residual=False)

    # --- f32 path, residual=True (default tiling: te=512, 2 grid steps) ---
    out = edge_sub_model_forward(src, dest, edge_attr, params, residual=True)
    out = jax.block_until_ready(out)
    assert out.shape == (E, out_edge_features)
    assert jnp.allclose(out, ref, atol=1e-5, rtol=1e-5), "f32 residual mismatch"

    # --- f32 path, residual=False ---
    out_nr = edge_sub_model_forward(src, dest, edge_attr, params,
                                    residual=False)
    out_nr = jax.block_until_ready(out_nr)
    assert jnp.allclose(out_nr, ref_nr, atol=1e-5, rtol=1e-5), "f32 mismatch"

    # --- exercise the inner lane-chunk loop (te=1024, chunk=256, 4 chunks) ---
    out_ch = edge_sub_model_forward(src, dest, edge_attr, params,
                                    residual=True, tile_e=1024,
                                    lane_chunk=256, min_grid_steps=1)
    out_ch = jax.block_until_ready(out_ch)
    assert jnp.allclose(out_ch, ref, atol=1e-5, rtol=1e-5), "chunked mismatch"

    # --- bf16 storage + bf16 output (halves HBM read/write bytes; f32 acc,
    #     h kept in f32, W2 upcast in-kernel) ---
    bf16 = lambda t: t.astype(jnp.bfloat16)
    params_bf16 = {k: bf16(v) for k, v in params.items()}
    out_bf = edge_sub_model_forward(bf16(src), bf16(dest), bf16(edge_attr),
                                    params_bf16, residual=True,
                                    out_dtype=jnp.bfloat16)
    out_bf = jax.block_until_ready(out_bf)
    assert jnp.allclose(out_bf.astype(jnp.float32), ref,
                        atol=5e-2, rtol=5e-2), "bf16 mismatch"

    print("KERNEL_OK")
</pallas_src>

<mosaic_0001>
module attributes {stable_mosaic.version = 11 : i64} {
  func.func @_edge_mlp_kernel(%arg0: i32, %arg1: memref<4x512xf32, #tpu.memory_space<vmem>>, %arg2: memref<4x512xf32, #tpu.memory_space<vmem>>, %arg3: memref<4x512xf32, #tpu.memory_space<vmem>>, %arg4: memref<32x4xf32, #tpu.memory_space<vmem>>, %arg5: memref<32x4xf32, #tpu.memory_space<vmem>>, %arg6: memref<32x4xf32, #tpu.memory_space<vmem>>, %arg7: memref<32x1xf32, #tpu.memory_space<vmem>>, %arg8: memref<4x32xf32, #tpu.memory_space<vmem>>, %arg9: memref<4x1xf32, #tpu.memory_space<vmem>>, %arg10: memref<4x512xf32, #tpu.memory_space<vmem>>) attributes {dimension_semantics = [#tpu.dimension_semantics<parallel>], iteration_bounds = array<i64: 2>, scalar_prefetch = 0 : i64, scratch_operands = 0 : i64, tpu.core_type = #tpu.core_type<tc>, window_params = [{transform_indices = @transform_0, window_bounds = array<i64: 4, 512>}, {transform_indices = @transform_1, window_bounds = array<i64: 4, 512>}, {transform_indices = @transform_2, window_bounds = array<i64: 4, 512>}, {pipeline_mode = #tpu.pipeline_mode<synchronous>, transform_indices = @transform_3, window_bounds = array<i64: 32, 4>}, {pipeline_mode = #tpu.pipeline_mode<synchronous>, transform_indices = @transform_4, window_bounds = array<i64: 32, 4>}, {pipeline_mode = #tpu.pipeline_mode<synchronous>, transform_indices = @transform_5, window_bounds = array<i64: 32, 4>}, {pipeline_mode = #tpu.pipeline_mode<synchronous>, transform_indices = @transform_6, window_bounds = array<i64: 32, 1>}, {pipeline_mode = #tpu.pipeline_mode<synchronous>, transform_indices = @transform_7, window_bounds = array<i64: 4, 32>}, {pipeline_mode = #tpu.pipeline_mode<synchronous>, transform_indices = @transform_8, window_bounds = array<i64: 4, 1>}, {transform_indices = @transform_9, window_bounds = array<i64: 4, 512>}]} {
    %c0 = arith.constant 0 : index
    %c0_0 = arith.constant 0 : index
    %0 = vector.load %arg4[%c0, %c0_0] : memref<32x4xf32, #tpu.memory_space<vmem>>, vector<32x4xf32>
    %c0_1 = arith.constant 0 : index
    %c0_2 = arith.constant 0 : index
    %1 = vector.load %arg5[%c0_1, %c0_2] : memref<32x4xf32, #tpu.memory_space<vmem>>, vector<32x4xf32>
    %c0_3 = arith.constant 0 : index
    %c0_4 = arith.constant 0 : index
    %2 = vector.load %arg6[%c0_3, %c0_4] : memref<32x4xf32, #tpu.memory_space<vmem>>, vector<32x4xf32>
    %c0_5 = arith.constant 0 : index
    %c0_6 = arith.constant 0 : index
    %3 = vector.load %arg7[%c0_5, %c0_6] : memref<32x1xf32, #tpu.memory_space<vmem>>, vector<32x1xf32>
    %c0_7 = arith.constant 0 : index
    %c0_8 = arith.constant 0 : index
    %4 = vector.load %arg8[%c0_7, %c0_8] : memref<4x32xf32, #tpu.memory_space<vmem>>, vector<4x32xf32>
    %c0_9 = arith.constant 0 : index
    %c0_10 = arith.constant 0 : index
    %5 = vector.load %arg9[%c0_9, %c0_10] : memref<4x1xf32, #tpu.memory_space<vmem>>, vector<4x1xf32>
    %c0_11 = arith.constant 0 : index
    %c0_12 = arith.constant 0 : index
    %6 = vector.load %arg1[%c0_11, %c0_12] : memref<4x512xf32, #tpu.memory_space<vmem>>, vector<4x512xf32>
    %c0_13 = arith.constant 0 : index
    %c0_14 = arith.constant 0 : index
    %7 = vector.load %arg2[%c0_13, %c0_14] : memref<4x512xf32, #tpu.memory_space<vmem>>, vector<4x512xf32>
    %c0_15 = arith.constant 0 : index
    %c0_16 = arith.constant 0 : index
    %8 = vector.load %arg3[%c0_15, %c0_16] : memref<4x512xf32, #tpu.memory_space<vmem>>, vector<4x512xf32>
    %cst = arith.constant dense<0.000000e+00> : vector<32x512xf32>
    %9 = tpu.matmul %0, %6, %cst {dimension_numbers = #tpu.dot_dimension_numbers<[1], [0], [0], [1], [0, 0, 1, 1], [], []>} : vector<32x4xf32>, vector<4x512xf32>, vector<32x512xf32> -> vector<32x512xf32>
    %cst_17 = arith.constant dense<0.000000e+00> : vector<32x512xf32>
    %10 = tpu.matmul %1, %7, %cst_17 {dimension_numbers = #tpu.dot_dimension_numbers<[1], [0], [0], [1], [0, 0, 1, 1], [], []>} : vector<32x4xf32>, vector<4x512xf32>, vector<32x512xf32> -> vector<32x512xf32>
    %11 = arith.addf %9, %10 : vector<32x512xf32>
    %cst_18 = arith.constant dense<0.000000e+00> : vector<32x512xf32>
    %12 = tpu.matmul %2, %8, %cst_18 {dimension_numbers = #tpu.dot_dimension_numbers<[1], [0], [0], [1], [0, 0, 1, 1], [], []>} : vector<32x4xf32>, vector<4x512xf32>, vector<32x512xf32> -> vector<32x512xf32>
    %13 = arith.addf %11, %12 : vector<32x512xf32>
    %14 = vector.broadcast %3 : vector<32x1xf32> to vector<32x512xf32>
    %15 = arith.addf %13, %14 : vector<32x512xf32>
    %cst_19 = arith.constant 0.000000e+00 : f32
    %16 = vector.broadcast %cst_19 : f32 to vector<32x512xf32>
    %17 = arith.maximumf %15, %16 : vector<32x512xf32>
    %cst_20 = arith.constant dense<0.000000e+00> : vector<4x512xf32>
    %18 = tpu.matmul %4, %17, %cst_20 {dimension_numbers = #tpu.dot_dimension_numbers<[1], [0], [0], [1], [0, 0, 1, 1], [], []>} : vector<4x32xf32>, vector<32x512xf32>, vector<4x512xf32> -> vector<4x512xf32>
    %19 = vector.broadcast %5 : vector<4x1xf32> to vector<4x512xf32>
    %20 = arith.addf %18, %19 : vector<4x512xf32>
    %21 = arith.addf %20, %8 : vector<4x512xf32>
    %c0_21 = arith.constant 0 : index
    %c0_22 = arith.constant 0 : index
    %22 = vector.load %arg10[%c0_21, %c0_22] : memref<4x512xf32, #tpu.memory_space<vmem>>, vector<4x512xf32>
    tpu.vector_store %arg10[%c0_21, %c0_22], %21 {strides = array<i32>} : memref<4x512xf32, #tpu.memory_space<vmem>>, vector<4x512xf32>,
    return
  }
  func.func @transform_0(%arg0: i32) -> (i32, i32) {
    %c0_i32 = arith.constant 0 : i32
    %c0_i32_0 = arith.constant 0 : i32
    return %c0_i32, %arg0 : i32, i32
  }
  func.func @transform_1(%arg0: i32) -> (i32, i32) {
    %c0_i32 = arith.constant 0 : i32
    %c0_i32_0 = arith.constant 0 : i32
    return %c0_i32, %arg0 : i32, i32
  }
  func.func @transform_2(%arg0: i32) -> (i32, i32) {
    %c0_i32 = arith.constant 0 : i32
    %c0_i32_0 = arith.constant 0 : i32
    return %c0_i32, %arg0 : i32, i32
  }
  func.func @transform_3(%arg0: i32) -> (i32, i32) {
    %c0_i32 = arith.constant 0 : i32
    %c0_i32_0 = arith.constant 0 : i32
    %c0_i32_1 = arith.constant 0 : i32
    return %c0_i32, %c0_i32_0 : i32, i32
  }
  func.func @transform_4(%arg0: i32) -> (i32, i32) {
    %c0_i32 = arith.constant 0 : i32
    %c0_i32_0 = arith.constant 0 : i32
    %c0_i32_1 = arith.constant 0 : i32
    return %c0_i32, %c0_i32_0 : i32, i32
  }
  func.func @transform_5(%arg0: i32) -> (i32, i32) {
    %c0_i32 = arith.constant 0 : i32
    %c0_i32_0 = arith.constant 0 : i32
    %c0_i32_1 = arith.constant 0 : i32
    return %c0_i32, %c0_i32_0 : i32, i32
  }
  func.func @transform_6(%arg0: i32) -> (i32, i32) {
    %c0_i32 = arith.constant 0 : i32
    %c0_i32_0 = arith.constant 0 : i32
    %c0_i32_1 = arith.constant 0 : i32
    return %c0_i32, %c0_i32_0 : i32, i32
  }
  func.func @transform_7(%arg0: i32) -> (i32, i32) {
    %c0_i32 = arith.constant 0 : i32
    %c0_i32_0 = arith.constant 0 : i32
    %c0_i32_1 = arith.constant 0 : i32
    return %c0_i32, %c0_i32_0 : i32, i32
  }
  func.func @transform_8(%arg0: i32) -> (i32, i32) {
    %c0_i32 = arith.constant 0 : i32
    %c0_i32_0 = arith.constant 0 : i32
    %c0_i32_1 = arith.constant 0 : i32
    return %c0_i32, %c0_i32_0 : i32, i32
  }
  func.func @transform_9(%arg0: i32) -> (i32, i32) {
    %c0_i32 = arith.constant 0 : i32
    %c0_i32_0 = arith.constant 0 : i32
    return %c0_i32, %arg0 : i32, i32
  }
}

</mosaic_0001>

<bundles_post_ra>
// kernel: tpu_custom_call.1
= control target key start
LH: loop header
LB: loop body
LE: loop exit
PB: predicated region body
PF: predicated region fallthrough
CT: control target
= control target key end

     0   :  { %14 = vsyncpa [#allocation3], 0  ;;  %s1853_s0 = inlined_call_operand.vmem [shape: f32[4,1000], index: 0, kind: input, shape index: {}]   ;;  %s1854_s1 = inlined_call_operand.vmem [shape: f32[4,1000], index: 1, kind: input, shape index: {}]   ;;  %s1855_s2 = inlined_call_operand.vmem [shape: f32[4,1000], index: 2, kind: input, shape index: {}]   ;;  %s1856_s3 = inlined_call_operand.vmem [shape: f32[32,4], index: 3, kind: input, shape index: {}]   ;;  %s1857_s4 = inlined_call_operand.vmem [shape: f32[32,4], index: 4, kind: input, shape index: {}]   ;;  %s1858_s5 = inlined_call_operand.vmem [shape: f32[32,4], index: 5, kind: input, shape index: {}]   ;;  %s1859_s6 = inlined_call_operand.vmem [shape: f32[32,1], index: 6, kind: input, shape index: {}]   ;;  %s1860_s7 = inlined_call_operand.vmem [shape: f32[4,32], index: 7, kind: input, shape index: {}]   ;;  %s1861_s8 = inlined_call_operand.vmem [shape: f32[4,1], index: 8, kind: input, shape index: {}]   ;;  %s1862_s9 = inlined_call_operand.hbm [shape: f32[4,1000], index: 9, kind: output, shape index: {}]  }
   0x1   :  { %16 = vsyncpa [#allocation3 + $0x1], 0  ;;  %s1612_s30 = smov 0   ;;  %s1614_s10 = smov 0  }
   0x2   :  { %s1616_s11 = smov 0   ;;  %s1618_s12 = smov 0  }
   0x3 LB: > { %1864 = sst [smem:[#allocation5_spill]] %s1553_s11  ;;  %s1633_s13 = sadd.s32 4294967295, %s1557_s12   ;;  %s1557_s12 = sphi %s1618_s12, %s1872_s12   ;;  %s1553_s11 = sphi %s1616_s11, %s1869_s11   ;;  %s1549_s10 = sphi %s1614_s10, %s1871_s10   ;;  %s1545_s30 = sphi %s1612_s30, %s1870_s30  }
   0x4   : > { %s1343_s14 = sadd.s32 4294967294, %s1557_s12   ;;  %s1637_s15 = sadd.s32 1, %s1557_s12  }
   0x5   : > { %s233_s16 = sadd.s32 1, %s1553_s11  ;;  %s230_s17 = ssub.s32 %s1557_s12, %s1637_s15 }
   0x6   : > { %p243_p0 = scmp.ne.s32.totalorder %s1553_s11, %s1549_s10  ;;  %p231_p1 = scmp.eq.s32.totalorder %s230_s17, 0 }
   0x7   : > { %p244_p2 = scmp.eq.s32.totalorder %s1633_s13, 1  ;;  %p249_p3 = scmp.ne.s32.totalorder %s1549_s10, %s1545_s30 }
   0x8   : > { %p250_p4 = scmp.eq.s32.totalorder %s1343_s14, 1  ;;  %p1346_p7 = scmp.ge.s32.totalorder %s1557_s12, 1 }
   0x9   : > { %s1648_s18 = scalar_select %p231_p1, %s1553_s11, %s233_s16  }
   0xa   : > { %p1650_p5 = por %p244_p2, %p243_p0  ;;  %p1654_p6 = por %p250_p4, %p249_p3 }
   0xb   : > { %1865 = sst [smem:[#allocation6_spill]] %s1648_s18  ;;  %p313_p8 = scmp.lt.s32.totalorder %s1557_s12, 3 }
   0xd   : > { %p314_p9 = pnand %p1346_p7, %p313_p8 }
   0xe   : > { %s1348_s21 = sshll.u32 (!%p314_p9), %s1633_s13, 2  ;;  %v1559_v0 = vmov (!%p314_p9), 0.0   ;;  %v1560_v1 = vmov (!%p314_p9), 0   ;;  %v390_v2 = vld [vmem:[%s1859_s6] sm:$0xff] (!%p314_p9)  ;;  %v392_v3 = vld [vmem:[%s1859_s6 + $0x10] sm:$0xff] (!%p314_p9)  ;;  %v391_v4 = vld [vmem:[%s1859_s6 + $0x8] sm:$0xff] (!%p314_p9) }
   0xf   : > { %317 = sbr.rel (%p314_p9) target bundleno = 530 (0x212), region = 56  ;;  %p360_p10 = scmp.lt.s32.totalorder (!%p314_p9), %s1348_s21, 7  ;;  %492 = vmatprep.mubr.f32.mxu0 (!%p314_p9), %v1559_v0  ;;  %581 = vmatprep.mubr.f32.mxu1 (!%p314_p9), %v1559_v0  ;;  %vm419_vm0 = vcmask (!%p314_p9), 1043456   ;;  %v382_v11 = vld [vmem:[%s1857_s4] sm:$0xff] (!%p314_p9)  ;;  %vm406_vm1 = vcmask (!%p314_p9), 31744   ;;  %v383_v16 = vld [vmem:[%s1857_s4 + $0x8] sm:$0xff] (!%p314_p9) }
  0x10   : > { %1487 = vset.pattern.permute.xlu0 (!%p314_p9), %v1560_v1  ;;  %1488 = vset.pattern.permute.xlu1 (!%p314_p9), %v1560_v1  ;;  %v395_v19 = vld [vmem:[%s1861_s8] sm:$0xf] (!%p314_p9)  ;;  %v393_v20 = vld [vmem:[%s1859_s6 + $0x18] sm:$0xff] (!%p314_p9)  ;;  %v384_v21 = vld [vmem:[%s1857_s4 + $0x10] sm:$0xff] (!%p314_p9)  ;;  %vm1083_vm2 = vcmask (!%p314_p9), 261120   ;;  %s356_s11 = sand.u32 (!%p314_p9), 1, %s1549_s10  }
  0x11   : > { %1028 = vperm.xlu0 (!%p314_p9), %1487, %v390_v2   ;;  %1038 = vperm.xlu1 (!%p314_p9), %1488, %v392_v3   ;;  %v385_v22 = vld [vmem:[%s1857_s4 + $0x18] sm:$0xff] (!%p314_p9)  ;;  %v378_v23 = vld [vmem:[%s1856_s3] sm:$0xff] (!%p314_p9)  ;;  %v379_v24 = vld [vmem:[%s1856_s3 + $0x8] sm:$0xff] (!%p314_p9)  ;;  %s1347_s18 = sshll.u32 (!%p314_p9), %s356_s11, 4 }
  0x12   : > { %v380_v25 = vld [vmem:[%s1856_s3 + $0x10] sm:$0xff] (!%p314_p9)  ;;  %v381_v26 = vld [vmem:[%s1856_s3 + $0x18] sm:$0xff] (!%p314_p9)  ;;  %v386_v27 = vld [vmem:[%s1858_s5] sm:$0xff] (!%p314_p9)  ;;  %s358_s27 = scalar_lea.vmem (!%p314_p9), [#allocation2], %s1347_s18 }
  0x13   : > { %v387_v28 = vld [vmem:[%s1858_s5 + $0x8] sm:$0xff] (!%p314_p9)  ;;  %v388_v29 = vld [vmem:[%s1858_s5 + $0x10] sm:$0xff] (!%p314_p9)  ;;  %v389_v30 = vld [vmem:[%s1858_s5 + $0x18] sm:$0xff] (!%p314_p9)  ;;  %s1260_s28 = sshll.u32 (!%p314_p9), %s358_s27, 4  ;;  %s1813_s28 = int_to_ptr.vmem [resolvable:$true] %s1260_s28 }
  0x15   : > { %1033 = vperm.xlu0 (!%p314_p9), %1487, %v391_v4   ;;  %1043 = vperm.xlu1 (!%p314_p9), %1488, %v393_v20  }
  0x16   : > { %s1874_s21 = smov (!%p360_p10, %s1348_s21), 7 }
  0x17   : > { %s1349_s24 = sshll.u32 %s1874_s21, 2  ;;  %s1561_s21 = smov [#allocation2]  }
  0x18   : > { %s363_s29 = scalar_lea.vmem %s1853_s0, %s1349_s24  ;;  %s369_s17 = scalar_lea.vmem %s1854_s1, %s1349_s24 }
  0x19   : > { %v398_v5 = vld [vmem:[%s369_s17] sm:$0xff]  ;;  %v399_v6 = vld [vmem:[%s369_s17 + $0x8] sm:$0xff]  ;;  %s375_s23 = scalar_lea.vmem %s1855_s2, %s1349_s24  ;;  %1080 = vperm.xlu0 %1487, %v395_v19   ;;  %s1397_s24 = sshll.u32 %s1633_s13, 8 }
  0x1a   : > { %v396_v7 = vld [vmem:[%s363_s29] sm:$0xff]  ;;  %v404_v8 = vcombine.high %v398_v5, %v398_v5  ;;  %v405_v9 = vcombine.high %v399_v6, %v399_v6  ;;  %v397_v10 = vld [vmem:[%s363_s29 + $0x8] sm:$0xff]  ;;  %s1811_s16 = scalar_lea.hbm %s1862_s9, %s1397_s24  ;;  %s1246_s13 = scalar_lea.sflag [#allocation3], %s356_s11 }
  0x1b   : > { %v608_v12 = vcombine.high %v396_v7, %v396_v7  ;;  %v609_v13 = vcombine.high %v397_v10, %v397_v10  ;;  %v1686_v14 = vld [vmem:[%s375_s23] sm:$0xff]  ;;  %v1688_v15 = vld [vmem:[%s375_s23 + $0x8] sm:$0xff]  ;;  %s1495_s17 = scalar_lea.vmem %s1813_s28, 256  ;;  %s1499_s22 = sshll.u32 %s1561_s21, 4  ;;  %s1500_s22 = int_to_ptr.vmem [resolvable:$false] %s1499_s22 }
  0x1c   : > { %1354 = vmatprep.subr.msk.mxu0 %vm419_vm0, %v404_v8  ;;  %1360 = vmatprep.subr.msk.mxu1 %vm419_vm0, %v405_v9  ;;  %v1703_v17 = vcombine.high %v1686_v14, %v1686_v14  ;;  %v1707_v18 = vcombine.high %v1688_v15, %v1688_v15  ;;  %p1496_p11 = scmp.ne.s32.totalorder %s1813_s28, %s1495_s17  ;;  %s1501_s23 = scalar_lea.vmem %s1500_s22, 512 }
  0x1d   : > { %1355 = vmatpush1.msk.msra.mxu0 %vm419_vm0, %v398_v5  ;;  %1361 = vmatpush1.msk.msra.mxu1 %vm419_vm0, %v399_v6  ;;  %p1502_p0 = scmp.lt.s32.totalorder %s1813_s28, %s1500_s22  ;;  %p1503_p1 = scmp.lt.s32.totalorder %s1501_s23, %s1495_s17 }
  0x1e   : > { %1356 = vmatmul.mubr.msk.f32.vlgmr.msra.gmra.mrb[0].mxu0 %vm406_vm1, %v382_v11  ;;  %1362 = vmatmul.mubr.msk.f32.vlgmr.msra.gmra.mrb[0].mxu1 %vm406_vm1, %v382_v11  ;;  %p1497_p12 = pnand %p1496_p11, %p1650_p5 }
  0x1f   : > { %498 = vmatprep.mubr.f32.mxu0 %v1559_v0  ;;  %587 = vmatprep.mubr.f32.mxu1 %v1559_v0  ;;  %p1504_p2 = por %p1503_p1, %p1502_p0 }
  0x20   : > { %1366 = vmatprep.subr.msk.mxu0 %vm419_vm0, %v608_v12  ;;  %1372 = vmatprep.subr.msk.mxu1 %vm419_vm0, %v609_v13  ;;  %p1498_p13 = pneg %p1497_p12 }
  0x21   : > { %1367 = vmatpush1.msk.msra.mxu0 %vm419_vm0, %v396_v7  ;;  %1373 = vmatpush1.msk.msra.mxu1 %vm419_vm0, %v397_v10 }
  0x22   : > { %1357 = vmatmul.mubr.msk.f32.gmra.mrb[2].mxu0 %vm406_vm1, %v383_v16  ;;  %1363 = vmatmul.mubr.msk.f32.gmra.mrb[2].mxu1 %vm406_vm1, %v383_v16  ;;  %p1505_p3 = pnand %p1504_p2, %p1498_p13 }
  0x23   : > { %504 = vmatprep.mubr.f32.mxu0 %v1559_v0  ;;  %593 = vmatprep.mubr.f32.mxu1 %v1559_v0 }
  0x24   : > { %1378 = vmatprep.subr.msk.mxu0 %vm419_vm0, %v1703_v17  ;;  %1384 = vmatprep.subr.msk.mxu1 %vm419_vm0, %v1707_v18 }
  0x26   : > { %1358 = vmatmul.mubr.msk.f32.gmra.mrb[4].mxu0 %vm406_vm1, %v384_v21  ;;  %1364 = vmatmul.mubr.msk.f32.gmra.mrb[4].mxu1 %vm406_vm1, %v384_v21 }
  0x27   : > { %510 = vmatprep.mubr.f32.mxu0 %v1559_v0  ;;  %599 = vmatprep.mubr.f32.mxu1 %v1559_v0 }
  0x2a   : > { %1359 = vmatmul.mubr.msk.f32.gmra.mrb[6].mxu0 %vm406_vm1, %v385_v22  ;;  %1365 = vmatmul.mubr.msk.f32.gmra.mrb[6].mxu1 %vm406_vm1, %v385_v22 }
  0x2b   : > { %694 = vmatprep.mubr.f32.mxu0 %v1559_v0  ;;  %783 = vmatprep.mubr.f32.mxu1 %v1559_v0 }
  0x2e   : > { %1368 = vmatmul.mubr.msk.f32.vlgmr.msra.gmra.mrb[0].mxu0 %vm406_vm1, %v378_v23  ;;  %1374 = vmatmul.mubr.msk.f32.vlgmr.msra.gmra.mrb[0].mxu1 %vm406_vm1, %v378_v23 }
  0x2f   : > { %700 = vmatprep.mubr.f32.mxu0 %v1559_v0  ;;  %789 = vmatprep.mubr.f32.mxu1 %v1559_v0 }
  0x30   : > { %1379 = vmatpush1.msk.msra.mxu0 %vm419_vm0, %v1686_v14  ;;  %1385 = vmatpush1.msk.msra.mxu1 %vm419_vm0, %v1688_v15 }
  0x32   : > { %1369 = vmatmul.mubr.msk.f32.gmra.mrb[2].mxu0 %vm406_vm1, %v379_v24  ;;  %1375 = vmatmul.mubr.msk.f32.gmra.mrb[2].mxu1 %vm406_vm1, %v379_v24 }
  0x33   : > { %706 = vmatprep.mubr.f32.mxu0 %v1559_v0  ;;  %795 = vmatprep.mubr.f32.mxu1 %v1559_v0 }
  0x36   : > { %1370 = vmatmul.mubr.msk.f32.gmra.mrb[4].mxu0 %vm406_vm1, %v380_v25  ;;  %1376 = vmatmul.mubr.msk.f32.gmra.mrb[4].mxu1 %vm406_vm1, %v380_v25 }
  0x37   : > { %712 = vmatprep.mubr.f32.mxu0 %v1559_v0  ;;  %801 = vmatprep.mubr.f32.mxu1 %v1559_v0 }
  0x3a   : > { %1371 = vmatmul.mubr.msk.f32.gmra.mrb[6].mxu0 %vm406_vm1, %v381_v26  ;;  %1377 = vmatmul.mubr.msk.f32.gmra.mrb[6].mxu1 %vm406_vm1, %v381_v26 }
  0x3b   : > { %896 = vmatprep.mubr.f32.mxu0 %v1559_v0  ;;  %985 = vmatprep.mubr.f32.mxu1 %v1559_v0 }
  0x3e   : > { %1380 = vmatmul.mubr.msk.f32.vlgmr.msra.gmra.mrb[0].mxu0 %vm406_vm1, %v386_v27  ;;  %1386 = vmatmul.mubr.msk.f32.vlgmr.msra.gmra.mrb[0].mxu1 %vm406_vm1, %v386_v27 }
  0x3f   : > { %902 = vmatprep.mubr.f32.mxu0 %v1559_v0  ;;  %991 = vmatprep.mubr.f32.mxu1 %v1559_v0 }
  0x42   : > { %1381 = vmatmul.mubr.msk.f32.gmra.mrb[2].mxu0 %vm406_vm1, %v387_v28  ;;  %1387 = vmatmul.mubr.msk.f32.gmra.mrb[2].mxu1 %vm406_vm1, %v387_v28 }
  0x43   : > { %908 = vmatprep.mubr.f32.mxu0 %v1559_v0  ;;  %997 = vmatprep.mubr.f32.mxu1 %v1559_v0 }
  0x46   : > { %1382 = vmatmul.mubr.msk.f32.gmra.mrb[4].mxu0 %vm406_vm1, %v388_v29  ;;  %1388 = vmatmul.mubr.msk.f32.gmra.mrb[4].mxu1 %vm406_vm1, %v388_v29 }
  0x47   : > { %914 = vmatprep.mubr.f32.mxu0 %v1559_v0  ;;  %1003 = vmatprep.mubr.f32.mxu1 %v1559_v0 }
  0x4a   : > { %1383 = vmatmul.mubr.msk.f32.gmra.mrb[6].mxu0 %vm406_vm1, %v389_v30  ;;  %1389 = vmatmul.mubr.msk.f32.gmra.mrb[6].mxu1 %vm406_vm1, %v389_v30 }
  0x4b   : > { %1151 = vmatprep.mubr.f32.mxu0 %v1559_v0  ;;  %1222 = vmatprep.mubr.f32.mxu1 %v1559_v0 }
  0x90   : > { %v1029_v31 = vpop.permute.xlu0 %1028  ;;  %v1039_v39 = vpop.permute.xlu1 %1038 }
  0x94   : > { %v1034_v36 = vpop.permute.xlu0 %1033  ;;  %v1044_v4 = vpop.permute.xlu1 %1043 }
 0x111   : > { %v898_v32 = vpop.f32.mrb[0].mxu0  ;;  %v987_v33 = vpop.f32.mrb[0].mxu1 }
 0x112   : > { %v900_v34 = vpop.f32.mrb[1].mxu0  ;;  %v989_v35 = vpop.f32.mrb[1].mxu1  ;;  %v1046_v37 = vadd.f32 %v1029_v31, %v898_v32  ;;  %v1048_v38 = vadd.f32 %v1029_v31, %v987_v33 }
 0x113   : > { %v1047_v40 = vadd.f32 %v1029_v31, %v900_v34  ;;  %v1049_v41 = vadd.f32 %v1029_v31, %v989_v35  ;;  %v394_v31 = vld [vmem:[%s1860_s7] sm:$0xf]  ;;  %v1081_v32 = vpop.permute.xlu0 %1080 }
 0x114   : > { %v1062_v50 = vmax.f32 %v1046_v37, 0.0  ;;  %v1064_v51 = vmax.f32 %v1048_v38, 0.0 }
 0x115   : > { %v904_v42 = vpop.f32.mrb[2].mxu0  ;;  %v993_v43 = vpop.f32.mrb[2].mxu1  ;;  %v1063_v54 = vmax.f32 %v1047_v40, 0.0  ;;  %v1065_v55 = vmax.f32 %v1049_v41, 0.0 }
 0x116   : > { %v1050_v44 = vadd.f32 %v1034_v36, %v904_v42  ;;  %v1052_v45 = vadd.f32 %v1034_v36, %v993_v43  ;;  %v906_v46 = vpop.f32.mrb[3].mxu0  ;;  %v995_v47 = vpop.f32.mrb[3].mxu1 }
 0x117   : > { %v1051_v48 = vadd.f32 %v1034_v36, %v906_v46  ;;  %v1053_v49 = vadd.f32 %v1034_v36, %v995_v47 }
 0x118   : > { %v1066_v52 = vmax.f32 %v1050_v44, 0.0  ;;  %v1068_v53 = vmax.f32 %v1052_v45, 0.0 }
 0x119   : > { %v1067_v56 = vmax.f32 %v1051_v48, 0.0  ;;  %v1069_v57 = vmax.f32 %v1053_v49, 0.0  ;;  %v910_v58 = vpop.f32.mrb[4].mxu0  ;;  %v999_v59 = vpop.f32.mrb[4].mxu1 }
 0x11a   : > { %v1400_v60 = vpack.c.bf16 %v1066_v52, %v1062_v50  ;;  %v1408_v61 = vpack.c.bf16 %v1068_v53, %v1064_v51  ;;  %v912_v62 = vpop.f32.mrb[5].mxu0  ;;  %v1001_v63 = vpop.f32.mrb[5].mxu1  ;;  %v1054_v2 = vadd.f32 %v1039_v39, %v910_v58  ;;  %v1056_v3 = vadd.f32 %v1039_v39, %v999_v59 }
 0x11b   : > { %v1398_v0 = vpack.c.bf16 %v1067_v56, %v1063_v54  ;;  %v1406_v1 = vpack.c.bf16 %v1069_v57, %v1065_v55  ;;  %v1055_v5 = vadd.f32 %v1039_v39, %v912_v62  ;;  %v1057_v6 = vadd.f32 %v1039_v39, %v1001_v63 }
 0x11c   : > { %v1070_v19 = vmax.f32 %v1054_v2, 0.0  ;;  %v1072_v20 = vmax.f32 %v1056_v3, 0.0 }
 0x11d   : > { %v916_v7 = vpop.f32.mrb[6].mxu0  ;;  %v1005_v8 = vpop.f32.mrb[6].mxu1  ;;  %1399 = vmatprep.subr.bf16.mxu0 %v1398_v0  ;;  %1407 = vmatprep.subr.bf16.mxu1 %v1406_v1  ;;  %v1071_v23 = vmax.f32 %v1055_v5, 0.0  ;;  %v1073_v24 = vmax.f32 %v1057_v6, 0.0 }
 0x11e   : > { %v1058_v9 = vadd.f32 %v1044_v4, %v916_v7  ;;  %v1060_v10 = vadd.f32 %v1044_v4, %v1005_v8  ;;  %v918_v11 = vpop.f32.mrb[7].mxu0  ;;  %v1007_v12 = vpop.f32.mrb[7].mxu1  ;;  %1401 = vmatpush1.bf16.msra.mxu0 %v1400_v60  ;;  %1409 = vmatpush1.bf16.msra.mxu1 %v1408_v61 }
 0x11f   : > { %v1059_v13 = vadd.f32 %v1044_v4, %v918_v11  ;;  %v1061_v16 = vadd.f32 %v1044_v4, %v1007_v12 }
 0x120   : > { %v1074_v21 = vmax.f32 %v1058_v9, 0.0  ;;  %v1076_v22 = vmax.f32 %v1060_v10, 0.0 }
 0x121   : > { %v1075_v25 = vmax.f32 %v1059_v13, 0.0  ;;  %v1077_v26 = vmax.f32 %v1061_v16, 0.0 }
 0x122   : > { %v1404_v27 = vpack.c.bf16 %v1074_v21, %v1070_v19  ;;  %v1412_v28 = vpack.c.bf16 %v1076_v22, %v1072_v20 }
 0x123   : > { %v1402_v29 = vpack.c.bf16 %v1075_v25, %v1071_v23  ;;  %v1410_v30 = vpack.c.bf16 %v1077_v26, %v1073_v24 }
 0x125   : > { %1403 = vmatprep.subr.bf16.mxu0 %v1402_v29  ;;  %1411 = vmatprep.subr.bf16.mxu1 %v1410_v30 }
 0x126   : > { %1405 = vmatpush1.bf16.msra.mxu0 %v1404_v27  ;;  %1413 = vmatpush1.bf16.msra.mxu1 %v1412_v28 }
 0x129   : > { %1390 = vmatmul.mubr.msk.f32.vlgmr.msra.gmra.mrb[8].mxu0 %vm1083_vm2, %v394_v31  ;;  %1391 = vmatmul.mubr.msk.f32.vlgmr.msra.gmra.mrb[8].mxu1 %vm1083_vm2, %v394_v31 }
 0x1fc   : > { %v1153_v33 = vpop.f32.mrb[8].mxu0  ;;  %v1224_v34 = vpop.f32.mrb[8].mxu1 }
 0x1fd   : > { %v1154_v35 = vadd.f32 %v1153_v33, %v1081_v32  ;;  %v1225_v36 = vadd.f32 %v1224_v34, %v1081_v32  ;;  %v1155_v37 = vpop.f32.mrb[9].mxu0  ;;  %v1226_v38 = vpop.f32.mrb[9].mxu1 }
 0x1fe   : > { %v1156_v39 = vadd.f32 %v1155_v37, %v1081_v32  ;;  %v1227_v40 = vadd.f32 %v1226_v38, %v1081_v32 }
 0x1ff   : > { %v1231_v41 = vadd.f32 %v1154_v35, %v1686_v14  ;;  %v1233_v42 = vadd.f32 %v1225_v36, %v1688_v15 }
 0x200   : > { %v1232_v43 = vadd.f32 %v1156_v39, %v1703_v17  ;;  %v1234_v44 = vadd.f32 %v1227_v40, %v1707_v18 }
 0x202   : > { %v1239_v45 = vcombine.low %v1231_v41, %v1232_v43  ;;  %v1240_v46 = vcombine.low %v1233_v42, %v1234_v44 }
 0x204   : > { %1243 = vst [vmem:[%s358_s27] sm:$0xff] %v1239_v45  ;;  %1244 = vst [vmem:[%s358_s27 + $0x8] sm:$0xff] %v1240_v46 }
 0x205   : > { %1508 = shalt.err (!%p1505_p3)
}
 0x206   : > { %s1509_s25 = scalar_lea.hbm %s1811_s16, 256  ;;  %s1513_s18 = scalar_lea.hbm %s1862_s9, 512 }
 0x207   : > { %p1510_p4 = scmp.ne.s32.totalorder %s1811_s16, %s1509_s25  ;;  %p1514_p9 = scmp.lt.u32.totalorder %s1811_s16, %s1862_s9 }
 0x208   : > { %p1515_p10 = scmp.lt.u32.totalorder %s1513_s18, %s1509_s25  ;;  %p1517_p12 = scmp.lt.u32.totalorder %s1509_s25, %s1811_s16 }
 0x209   : > { %p1511_p7 = pnand %p1510_p4, %p1650_p5 }
 0x20a   : > { %p1516_p11 = por %p1515_p10, %p1514_p9 }
 0x20b   : > { %p1512_p8 = pneg %p1511_p7 }
 0x20c   : > { %p1518_p13 = por %p1517_p12, %p1516_p11 }
 0x20e   : > { %p1519_p0 = pnand %p1518_p13, %p1512_p8 }
 0x210   : > { %1522 = shalt.err (!%p1519_p0)
}
 0x211   : > { %1446 = dma.vmem_to_hbm [thread:$0]  (%p1650_p5), %s1813_s28, 256, %s1811_s16, %s1246_s13  }
 0x212 PF: > { %p1452_p1 = scmp.ge.s32.totalorder %s1557_s12, 2  ;;  %s1272_s29 = sand.u32 1, %s1545_s30  }
 0x213   : > { %s1273_s14 = scalar_lea.sflag [#allocation3], %s1272_s29 }
 0x214   : > { %p1449_p2 = pnand %p1452_p1, %p1654_p6 }
 0x216   : > { %1540 = dma.done.wait (!%p1449_p2), %s1273_s14, 256  }
 0x217   : > { %1542 = vsyncadd (!%p1449_p2), %s1273_s14, 4294967040  ;;  %s1868_s17 = sld [smem:[#allocation5_spill]]  ;;  %s1869_s11 = sld [smem:[#allocation6_spill]] }
 0x218   : > { %p19_p3 = scmp.ge.s32.totalorder %s1637_s15, 4   ;;  %s1870_s30 = smov %s1549_s10 }
 0x219   : > { %s1872_s12 = smov %s1637_s15 }
 0x21a   :  { %21 = sbr.rel (!%p19_p3) target bundleno = 3 (0x3), region = 97 }
 0x21d   : > { %s1871_s10 = smov %s1868_s17 }
 0x221   :  { %1278 = vsyncpa [#allocation3], 1 }
 0x222   :  { %1280 = vsyncpa [#allocation3 + $0x1], 1 }

</bundles_post_ra>
